<compile_context>
chip_gen: v7x
topology: tpu7x:2x2x1
jax: 0.10.0
libtpu: 0.0.40
codegen_flags: <defaults>
</compile_context>

<pallas_src>
import jax
import jax.numpy as jnp
from jax.experimental import pallas as pl
from jax.experimental.pallas import tpu as pltpu


def _round_up(x, m):
    return ((x + m - 1) // m) * m


def _encoder_kernel(m_ref, w1_ref, b1_ref, w2_ref, b2_ref, gmu_ref, gsig_ref,
                    mu_ref, sigma_ref):
    # m_ref: (tb, Dm) f32 (native dtype, single HBM pass); cast to bf16 here,
    # on the VPU, just before feeding the MXU.
    m = m_ref[...].astype(jnp.bfloat16)
    # Linear 1: bf16 x bf16 MXU, f32 accumulate
    h = jnp.dot(m, w1_ref[...], preferred_element_type=jnp.float32)       # (tb, H) f32
    h = jnp.maximum(h + b1_ref[...], 0.0)                                  # bias + ReLU, f32 VPU
    # Linear 2: cast only the dot operand to bf16; accumulate in f32
    e = jnp.dot(h.astype(jnp.bfloat16), w2_ref[...],
                preferred_element_type=jnp.float32)                        # (tb, L) f32
    e = jnp.tanh(e + b2_ref[...])                                          # bias + tanh, f32 EUP
    # Two gamma-scaled outputs, fused in one kernel (lane-dense, L = 256).
    mu_ref[...] = (e * gmu_ref[...]).astype(mu_ref.dtype)
    sigma_ref[...] = (e * gsig_ref[...]).astype(sigma_ref.dtype)


def watermark_encoder(m, w1, b1, w2, b2, gamma_mu, gamma_sigma, *,
                      tile_b=None, out_dtype=jnp.bfloat16):
    """m: (B, msg_length) message.

    w1: (msg_length, 128), b1: (128,), w2: (128, latent_dim), b2: (latent_dim,)
    gamma_mu / gamma_sigma: (latent_dim,)
    Returns (encoded * gamma_mu, encoded * gamma_sigma), each (B, latent_dim)
    in `out_dtype` (bf16 by default — the kernel is HBM-writeback bound, so
    this is the dominant perf lever; pass out_dtype=jnp.float32 for exact
    PyTorch output dtype).
    """
    B, Dm = m.shape
    H = w1.shape[1]
    L = w2.shape[1]

    # Batch tile: multiple of 16 (bf16 sublane packing for the outputs),
    # capped at 2048 rows, and chosen so large batches produce >= 2 grid
    # steps (so the "parallel" axis can shard across v7x's two TensorCores).
    if tile_b is None:
        half = _round_up(max(1, -(-B // 2)), 16)   # ceil(B/2), rounded to 16
        tile_b = min(2048, half)
    assert tile_b % 16 == 0, "tile_b must be a multiple of 16"

    grid = (pl.cdiv(B, tile_b),)

    # Matches torch's m.float(); a no-op when m is already f32. m itself is
    # NOT pre-cast to bf16 — that happens inside the kernel.
    m_f32 = m.astype(jnp.float32)
    # Weight casts are ~40K params total; negligible (hoist out of the hot
    # path by pre-casting once if this wrapper is called repeatedly).
    w1_bf = w1.astype(jnp.bfloat16)
    w2_bf = w2.astype(jnp.bfloat16)
    b1_2d = b1.reshape(1, H).astype(jnp.float32)
    b2_2d = b2.reshape(1, L).astype(jnp.float32)
    gmu_2d = gamma_mu.reshape(1, L).astype(jnp.float32)
    gsig_2d = gamma_sigma.reshape(1, L).astype(jnp.float32)

    out_itemsize = jnp.dtype(out_dtype).itemsize
    cost = pl.CostEstimate(
        flops=2 * B * (Dm * H + H * L),
        transcendentals=B * L,
        bytes_accessed=(m_f32.size * 4                       # f32 input, one pass
                        + (w1_bf.size + w2_bf.size) * 2      # bf16 weights
                        + (b1_2d.size + b2_2d.size + gmu_2d.size + gsig_2d.size) * 4
                        + 2 * B * L * out_itemsize),         # two outputs
    )

    mu, sigma = pl.pallas_call(
        _encoder_kernel,
        out_shape=(jax.ShapeDtypeStruct((B, L), out_dtype),
                   jax.ShapeDtypeStruct((B, L), out_dtype)),
        grid_spec=pltpu.PrefetchScalarGridSpec(
            num_scalar_prefetch=0,
            grid=grid,
            in_specs=[
                pl.BlockSpec((tile_b, Dm), lambda i: (i, 0)),  # m tile (pipelined; ragged last block masked)
                pl.BlockSpec((Dm, H), lambda i: (0, 0)),       # W1 (resident)
                pl.BlockSpec((1, H), lambda i: (0, 0)),        # b1
                pl.BlockSpec((H, L), lambda i: (0, 0)),        # W2 (resident)
                pl.BlockSpec((1, L), lambda i: (0, 0)),        # b2
                pl.BlockSpec((1, L), lambda i: (0, 0)),        # gamma_mu
                pl.BlockSpec((1, L), lambda i: (0, 0)),        # gamma_sigma
            ],
            out_specs=[pl.BlockSpec((tile_b, L), lambda i: (i, 0)),
                       pl.BlockSpec((tile_b, L), lambda i: (i, 0))],
        ),
        compiler_params=pltpu.CompilerParams(
            dimension_semantics=("parallel",),
            vmem_limit_bytes=32 * 1024 * 1024,
        ),
        cost_estimate=cost,
    )(m_f32, w1_bf, b1_2d, w2_bf, b2_2d, gmu_2d, gsig_2d)

    return mu, sigma


def _reference_f32(m, w1, b1, w2, b2, gamma_mu, gamma_sigma):
    # True f32 reference matching the PyTorch module (no bf16 recipe), so the
    # test validates actual numerical fidelity vs. the original model.
    h = jnp.maximum(jnp.dot(m.astype(jnp.float32), w1) + b1.reshape(1, -1), 0.0)
    e = jnp.tanh(jnp.dot(h, w2) + b2.reshape(1, -1))
    return e * gamma_mu.reshape(1, -1), e * gamma_sigma.reshape(1, -1)


if __name__ == "__main__":
    msg_length = 64
    hidden = 128
    latent_dim = 256
    batch = 24  # deliberately not a tile multiple to exercise the ragged last block

    key = jax.random.PRNGKey(0)
    k = jax.random.split(key, 7)

    # Binary watermark message + deterministic synthetic params
    m = jax.random.bernoulli(k[0], 0.5, (batch, msg_length)).astype(jnp.float32)
    w1 = jax.random.normal(k[1], (msg_length, hidden), dtype=jnp.float32) * 0.05
    b1 = jax.random.normal(k[2], (hidden,), dtype=jnp.float32) * 0.05
    w2 = jax.random.normal(k[3], (hidden, latent_dim), dtype=jnp.float32) * 0.05
    b2 = jax.random.normal(k[4], (latent_dim,), dtype=jnp.float32) * 0.05
    gamma_mu = 1.0 + 0.1 * jax.random.normal(k[5], (latent_dim,), dtype=jnp.float32)
    gamma_sigma = 1.0 + 0.1 * jax.random.normal(k[6], (latent_dim,), dtype=jnp.float32)

    ref_mu, ref_sigma = _reference_f32(m, w1, b1, w2, b2, gamma_mu, gamma_sigma)

    # Default tiling (ceil(B/2)->16 rows/tile => 2 grid steps) + bf16 outputs.
    mu, sigma = watermark_encoder(m, w1, b1, w2, b2, gamma_mu, gamma_sigma)
    mu, sigma = jax.block_until_ready((mu, sigma))
    assert mu.shape == (batch, latent_dim) and sigma.shape == (batch, latent_dim)
    assert mu.dtype == jnp.bfloat16 and sigma.dtype == jnp.bfloat16
    assert jnp.allclose(mu.astype(jnp.float32), ref_mu, atol=2e-2, rtol=2e-2), \
        "mu mismatch vs. f32 reference"
    assert jnp.allclose(sigma.astype(jnp.float32), ref_sigma, atol=2e-2, rtol=2e-2), \
        "sigma mismatch vs. f32 reference"

    # Explicit small tile (grid of 2 with a ragged last block of 8 rows) and
    # f32 outputs (exact PyTorch output dtype; bf16 MXU operands remain).
    mu2, sigma2 = watermark_encoder(m, w1, b1, w2, b2, gamma_mu, gamma_sigma,
                                    tile_b=16, out_dtype=jnp.float32)
    mu2, sigma2 = jax.block_until_ready((mu2, sigma2))
    assert mu2.dtype == jnp.float32 and sigma2.dtype == jnp.float32
    assert jnp.allclose(mu2, ref_mu, atol=1e-2, rtol=1e-2), \
        "mu (f32 out, tiled) mismatch vs. f32 reference"
    assert jnp.allclose(sigma2, ref_sigma, atol=1e-2, rtol=1e-2), \
        "sigma (f32 out, tiled) mismatch vs. f32 reference"

    print("KERNEL_OK")
</pallas_src>

<mosaic_0001>
module attributes {stable_mosaic.version = 11 : i64} {
  func.func @_encoder_kernel(%arg0: i32, %arg1: memref<16x64xf32, #tpu.memory_space<vmem>>, %arg2: memref<64x128xbf16, #tpu.memory_space<vmem>>, %arg3: memref<1x128xf32, #tpu.memory_space<vmem>>, %arg4: memref<128x256xbf16, #tpu.memory_space<vmem>>, %arg5: memref<1x256xf32, #tpu.memory_space<vmem>>, %arg6: memref<1x256xf32, #tpu.memory_space<vmem>>, %arg7: memref<1x256xf32, #tpu.memory_space<vmem>>, %arg8: memref<16x256xbf16, #tpu.memory_space<vmem>>, %arg9: memref<16x256xbf16, #tpu.memory_space<vmem>>) attributes {dimension_semantics = [#tpu.dimension_semantics<parallel>], iteration_bounds = array<i64: 2>, scalar_prefetch = 0 : i64, scratch_operands = 0 : i64, tpu.core_type = #tpu.core_type<tc>, window_params = [{transform_indices = @transform_0, window_bounds = array<i64: 16, 64>}, {pipeline_mode = #tpu.pipeline_mode<synchronous>, transform_indices = @transform_1, window_bounds = array<i64: 64, 128>}, {pipeline_mode = #tpu.pipeline_mode<synchronous>, transform_indices = @transform_2, window_bounds = array<i64: 1, 128>}, {pipeline_mode = #tpu.pipeline_mode<synchronous>, transform_indices = @transform_3, window_bounds = array<i64: 128, 256>}, {pipeline_mode = #tpu.pipeline_mode<synchronous>, transform_indices = @transform_4, window_bounds = array<i64: 1, 256>}, {pipeline_mode = #tpu.pipeline_mode<synchronous>, transform_indices = @transform_5, window_bounds = array<i64: 1, 256>}, {pipeline_mode = #tpu.pipeline_mode<synchronous>, transform_indices = @transform_6, window_bounds = array<i64: 1, 256>}, {transform_indices = @transform_7, window_bounds = array<i64: 16, 256>}, {transform_indices = @transform_8, window_bounds = array<i64: 16, 256>}]} {
    %c0 = arith.constant 0 : index
    %c0_0 = arith.constant 0 : index
    %0 = vector.load %arg1[%c0, %c0_0] : memref<16x64xf32, #tpu.memory_space<vmem>>, vector<16x64xf32>
    %1 = arith.truncf %0 : vector<16x64xf32> to vector<16x64xbf16>
    %c0_1 = arith.constant 0 : index
    %c0_2 = arith.constant 0 : index
    %2 = vector.load %arg2[%c0_1, %c0_2] : memref<64x128xbf16, #tpu.memory_space<vmem>>, vector<64x128xbf16>
    %cst = arith.constant dense<0.000000e+00> : vector<16x128xf32>
    %3 = tpu.matmul %1, %2, %cst {dimension_numbers = #tpu.dot_dimension_numbers<[1], [0], [0], [1], [0, 0, 1, 1], [], []>} : vector<16x64xbf16>, vector<64x128xbf16>, vector<16x128xf32> -> vector<16x128xf32>
    %c0_3 = arith.constant 0 : index
    %c0_4 = arith.constant 0 : index
    %4 = vector.load %arg3[%c0_3, %c0_4] : memref<1x128xf32, #tpu.memory_space<vmem>>, vector<1x128xf32>
    %5 = vector.broadcast %4 : vector<1x128xf32> to vector<16x128xf32>
    %6 = arith.addf %3, %5 : vector<16x128xf32>
    %cst_5 = arith.constant 0.000000e+00 : f32
    %7 = vector.broadcast %cst_5 : f32 to vector<16x128xf32>
    %8 = arith.maximumf %6, %7 : vector<16x128xf32>
    %9 = arith.truncf %8 : vector<16x128xf32> to vector<16x128xbf16>
    %c0_6 = arith.constant 0 : index
    %c0_7 = arith.constant 0 : index
    %10 = vector.load %arg4[%c0_6, %c0_7] : memref<128x256xbf16, #tpu.memory_space<vmem>>, vector<128x256xbf16>
    %cst_8 = arith.constant dense<0.000000e+00> : vector<16x256xf32>
    %11 = tpu.matmul %9, %10, %cst_8 {dimension_numbers = #tpu.dot_dimension_numbers<[1], [0], [0], [1], [0, 0, 1, 1], [], []>} : vector<16x128xbf16>, vector<128x256xbf16>, vector<16x256xf32> -> vector<16x256xf32>
    %c0_9 = arith.constant 0 : index
    %c0_10 = arith.constant 0 : index
    %12 = vector.load %arg5[%c0_9, %c0_10] : memref<1x256xf32, #tpu.memory_space<vmem>>, vector<1x256xf32>
    %13 = vector.broadcast %12 : vector<1x256xf32> to vector<16x256xf32>
    %14 = arith.addf %11, %13 : vector<16x256xf32>
    %15 = math.tanh %14 : vector<16x256xf32>
    %c0_11 = arith.constant 0 : index
    %c0_12 = arith.constant 0 : index
    %16 = vector.load %arg6[%c0_11, %c0_12] : memref<1x256xf32, #tpu.memory_space<vmem>>, vector<1x256xf32>
    %17 = vector.broadcast %16 : vector<1x256xf32> to vector<16x256xf32>
    %18 = arith.mulf %15, %17 : vector<16x256xf32>
    %19 = arith.truncf %18 : vector<16x256xf32> to vector<16x256xbf16>
    %c0_13 = arith.constant 0 : index
    %c0_14 = arith.constant 0 : index
    %20 = vector.load %arg8[%c0_13, %c0_14] : memref<16x256xbf16, #tpu.memory_space<vmem>>, vector<16x256xbf16>
    tpu.vector_store %arg8[%c0_13, %c0_14], %19 {strides = array<i32>} : memref<16x256xbf16, #tpu.memory_space<vmem>>, vector<16x256xbf16>,
    %c0_15 = arith.constant 0 : index
    %c0_16 = arith.constant 0 : index
    %21 = vector.load %arg7[%c0_15, %c0_16] : memref<1x256xf32, #tpu.memory_space<vmem>>, vector<1x256xf32>
    %22 = vector.broadcast %21 : vector<1x256xf32> to vector<16x256xf32>
    %23 = arith.mulf %15, %22 : vector<16x256xf32>
    %24 = arith.truncf %23 : vector<16x256xf32> to vector<16x256xbf16>
    %c0_17 = arith.constant 0 : index
    %c0_18 = arith.constant 0 : index
    %25 = vector.load %arg9[%c0_17, %c0_18] : memref<16x256xbf16, #tpu.memory_space<vmem>>, vector<16x256xbf16>
    tpu.vector_store %arg9[%c0_17, %c0_18], %24 {strides = array<i32>} : memref<16x256xbf16, #tpu.memory_space<vmem>>, vector<16x256xbf16>,
    return
  }
  func.func @transform_0(%arg0: i32) -> (i32, i32) {
    %c0_i32 = arith.constant 0 : i32
    %c0_i32_0 = arith.constant 0 : i32
    return %arg0, %c0_i32 : i32, i32
  }
  func.func @transform_1(%arg0: i32) -> (i32, i32) {
    %c0_i32 = arith.constant 0 : i32
    %c0_i32_0 = arith.constant 0 : i32
    %c0_i32_1 = arith.constant 0 : i32
    return %c0_i32, %c0_i32_0 : i32, i32
  }
  func.func @transform_2(%arg0: i32) -> (i32, i32) {
    %c0_i32 = arith.constant 0 : i32
    %c0_i32_0 = arith.constant 0 : i32
    %c0_i32_1 = arith.constant 0 : i32
    return %c0_i32, %c0_i32_0 : i32, i32
  }
  func.func @transform_3(%arg0: i32) -> (i32, i32) {
    %c0_i32 = arith.constant 0 : i32
    %c0_i32_0 = arith.constant 0 : i32
    %c0_i32_1 = arith.constant 0 : i32
    return %c0_i32, %c0_i32_0 : i32, i32
  }
  func.func @transform_4(%arg0: i32) -> (i32, i32) {
    %c0_i32 = arith.constant 0 : i32
    %c0_i32_0 = arith.constant 0 : i32
    %c0_i32_1 = arith.constant 0 : i32
    return %c0_i32, %c0_i32_0 : i32, i32
  }
  func.func @transform_5(%arg0: i32) -> (i32, i32) {
    %c0_i32 = arith.constant 0 : i32
    %c0_i32_0 = arith.constant 0 : i32
    %c0_i32_1 = arith.constant 0 : i32
    return %c0_i32, %c0_i32_0 : i32, i32
  }
  func.func @transform_6(%arg0: i32) -> (i32, i32) {
    %c0_i32 = arith.constant 0 : i32
    %c0_i32_0 = arith.constant 0 : i32
    %c0_i32_1 = arith.constant 0 : i32
    return %c0_i32, %c0_i32_0 : i32, i32
  }
  func.func @transform_7(%arg0: i32) -> (i32, i32) {
    %c0_i32 = arith.constant 0 : i32
    %c0_i32_0 = arith.constant 0 : i32
    return %arg0, %c0_i32 : i32, i32
  }
  func.func @transform_8(%arg0: i32) -> (i32, i32) {
    %c0_i32 = arith.constant 0 : i32
    %c0_i32_0 = arith.constant 0 : i32
    return %arg0, %c0_i32 : i32, i32
  }
}

</mosaic_0001>

<bundles_post_ra>
// kernel: tpu_custom_call.1
= control target key start
LH: loop header
LB: loop body
LE: loop exit
PB: predicated region body
PF: predicated region fallthrough
CT: control target
= control target key end

     0   :  { %14 = vsyncpa [#allocation3], 0  ;;  %s1635_s0 = inlined_call_operand.hbm [shape: f32[24,64], index: 0, kind: input, shape index: {}]   ;;  %s1636_s1 = inlined_call_operand.hbm [shape: bf16[64,128], index: 1, kind: input, shape index: {}]   ;;  %s1637_s2 = inlined_call_operand.vmem [shape: f32[1,128], index: 2, kind: input, shape index: {}]   ;;  %s1638_s3 = inlined_call_operand.hbm [shape: bf16[128,256], index: 3, kind: input, shape index: {}]   ;;  %s1639_s4 = inlined_call_operand.vmem [shape: f32[1,256], index: 4, kind: input, shape index: {}]   ;;  %s1640_s5 = inlined_call_operand.vmem [shape: f32[1,256], index: 5, kind: input, shape index: {}]   ;;  %s1641_s6 = inlined_call_operand.vmem [shape: f32[1,256], index: 6, kind: input, shape index: {}]   ;;  %s1642_s7 = inlined_call_operand.hbm [shape: bf16[24,256], index: 7, kind: output, shape index: {0}]   ;;  %s1643_s8 = inlined_call_operand.hbm [shape: bf16[24,256], index: 8, kind: output, shape index: {1}]  }
   0x1   :  { %16 = vsyncpa [#allocation3 + $0x1], 0 }
   0x2   :  { %17 = vsyncpa [#allocation6], 0 }
   0x3   :  { %18 = vsyncpa [#allocation4], 0 }
   0x4   :  { %20 = vsyncpa [#allocation4 + $0x1], 0 }
   0x5   :  { %21 = vsyncpa [#allocation10], 0 }
   0x6   :  { %23 = vsyncpa [#allocation10 + $0x1], 0  ;;  %s1324_s27 = smov 0   ;;  %s1326_s28 = smov 0  }
   0x7   :  { %s1328_s29 = smov 0   ;;  %s1330_s30 = smov 0  }
   0x8 LB: > { %1651 = sst [smem:[#allocation15_spill]] %s1247_s27  ;;  %s1345_s9 = sadd.s32 4294967295, %s1259_s30   ;;  %s1259_s30 = sphi %s1330_s30, %s1671_s30   ;;  %s1255_s29 = sphi %s1328_s29, %s1675_s29   ;;  %s1251_s28 = sphi %s1326_s28, %s1674_s28   ;;  %s1247_s27 = sphi %s1324_s27, %s1673_s27  }
   0x9   : > { %s868_s10 = sadd.s32 4294967294, %s1259_s30   ;;  %s1349_s11 = sadd.s32 1, %s1259_s30  }
   0xa   : > { %1652 = sst [smem:[#allocation16_spill]] %s1349_s11  ;;  %s36_s12 = sadd.s32 1, %s1255_s29 }
   0xb   : > { %s33_s13 = ssub.s32 %s1259_s30, %s1349_s11  ;;  %p43_p0 = scmp.ne.s32.totalorder %s1255_s29, %s1251_s28 }
   0xc   : > { %p34_p1 = scmp.eq.s32.totalorder %s33_s13, 0  ;;  %p44_p2 = scmp.eq.s32.totalorder %s1259_s30, 0 }
   0xd   : > { %p49_p3 = scmp.ne.s32.totalorder %s1251_s28, %s1247_s27  ;;  %p1644_p4 = scmp.eq.s32.totalorder %s1345_s9, 0 }
   0xe   : > { %s1361_s14 = scalar_select %p34_p1, %s1255_s29, %s36_s12  }
   0xf   : > { %p1363_p5 = por %p44_p2, %p43_p0  ;;  %p1369_p6 = por %p1644_p4, %p49_p3 }
  0x10   : > { %1653 = sst [smem:[#allocation17_spill]] %s1361_s14  ;;  %p199_p7 = scmp.eq.s32.totalorder %s1345_s9, 1 }
  0x11   : > { %s1654_s15 = scalar_select %p1363_p5, 1, 0 }
  0x12   : > { %s1655_s16 = scalar_select %p1369_p6, 1, 0 }
  0x13   : > { %p205_p8 = scmp.eq.s32.totalorder %s868_s10, 1  ;;  %p869_p9 = scmp.ge.s32.totalorder %s1259_s30, 1 }
  0x14   : > { %p238_p10 = scmp.lt.s32.totalorder %s1259_s30, 3  ;;  %p1376_p11 = por %p199_p7, %p43_p0 }
  0x15   : > { %p1380_p12 = por %p205_p8, %p49_p3  ;;  %s1261_s20 = smov [#allocation5]  }
  0x16   : > { %s1656_s17 = scalar_select %p1376_p11, 1, 0 }
  0x17   : > { %s1657_s18 = scalar_select %p1380_p12, 1, 0 }
  0x18   : > { %p1384_p13 = pnand %p869_p9, %p238_p10  ;;  %s250_s21 = sshll.u32 %s1261_s20, 4  ;;  %s251_s21 = int_to_ptr.vmem [resolvable:$true] %s250_s21 }
  0x19   : > { %1658 = sst [smem:[#allocation18_spill]] %s1657_s18  ;;  %s1262_s23 = smov [#allocation7]  }
  0x1a   : > { %s1659_s19 = scalar_select %p1384_p13, 1, 0 }
  0x1b   : > { %p971_p1 = pneg %p1384_p13  ;;  %s266_s24 = sshll.u32 %s1262_s23, 4  ;;  %s1396_s24 = int_to_ptr.vmem [resolvable:$true] %s266_s24 }
  0x1c   : > { %s1073_s10 = scalar_lea.hbm %s1636_s1, 512 }
  0x1d   : > { %p1392_p2 = pnand %p971_p1, %p1644_p4  ;;  %p1074_p0 = scmp.ne.s32.totalorder %s1636_s1, %s1073_s10 }
  0x1e   : > { %p1080_p9 = scmp.lt.u32.totalorder %s1073_s10, %s1636_s1 }
  0x1f   : > { %p1075_p3 = pneg %p1392_p2 }
  0x21   : > { %p1076_p7 = pnand %p1075_p3, %p1074_p0 }
  0x23   : > { %p1077_p8 = pneg %p1076_p7 }
  0x25   : > { %p1082_p10 = pnand %p1080_p9, %p1077_p8 }
  0x27   : > { %1085 = shalt.err (!%p1082_p10)
}
  0x28   : > { %s1086_s23 = scalar_lea.vmem %s251_s21, 512  ;;  %p1094_p11 = scmp.lt.s32.totalorder %s251_s21, %s251_s21 }
  0x29   : > { %p1087_p1 = scmp.ne.s32.totalorder %s251_s21, %s1086_s23  ;;  %p1095_p6 = scmp.lt.s32.totalorder %s1086_s23, %s1086_s23 }
  0x2b   : > { %p1089_p4 = pnand %p1087_p1, %p1075_p3  ;;  %p1096_p13 = por %p1095_p6, %p1094_p11 }
  0x2d   : > { %p1090_p12 = pneg %p1089_p4 }
  0x2f   : > { %p1097_p5 = pnand %p1096_p13, %p1090_p12 }
  0x31   : > { %1100 = shalt.err (!%p1097_p5)
}
  0x32   : > { %s1263_s25 = smov 64   ;;  %s1264_s26 = smov 4  }
  0x33   : > { %974 = dma.hbm_to_vmem [thread:$0]  (!%p1392_p2), %s1636_s1, 512, %s251_s21, [#allocation6], %s1263_s25, %s1263_s25, %s1264_s26  }
  0x34   : > { %s1101_s20 = scalar_lea.hbm %s1638_s3, 2048 }
  0x35   : > { %p1102_p4 = scmp.ne.s32.totalorder %s1638_s3, %s1101_s20  ;;  %p1108_p11 = scmp.lt.u32.totalorder %s1101_s20, %s1638_s3 }
  0x37   : > { %p1104_p5 = pnand %p1102_p4, %p1075_p3 }
  0x39   : > { %p1105_p6 = pneg %p1104_p5 }
  0x3b   : > { %p1110_p12 = pnand %p1108_p11, %p1105_p6 }
  0x3d   : > { %1113 = shalt.err (!%p1110_p12)
}
  0x3e   : > { %s1114_s21 = scalar_lea.vmem %s1396_s24, 2048  ;;  %p1122_p8 = scmp.lt.s32.totalorder %s1396_s24, %s1396_s24 }
  0x3f   : > { %p1115_p13 = scmp.ne.s32.totalorder %s1396_s24, %s1114_s21  ;;  %p1123_p9 = scmp.lt.s32.totalorder %s1114_s21, %s1114_s21 }
  0x41   : > { %p1117_p0 = pnand %p1115_p13, %p1075_p3  ;;  %p1124_p10 = por %p1123_p9, %p1122_p8 }
  0x43   : > { %p1118_p7 = pneg %p1117_p0 }
  0x45   : > { %p1125_p1 = pnand %p1124_p10, %p1118_p7 }
  0x47   : > { %1128 = shalt.err (!%p1125_p1)
}
  0x48   : > { %s1265_s27 = smov 128   ;;  %s1266_s11 = smov 8  }
  0x49   : > { %977 = dma.hbm_to_vmem [thread:$0]  (!%p1392_p2), %s1638_s3, 2048, %s1396_s24, [#allocation6], %s1265_s27, %s1265_s27, %s1266_s11  }
  0x4a   : > { %p872_p4 = scmp.ge.s32.totalorder %s1259_s30, 2 }
  0x4b   : > { %p1661_p3 = scmp.ne.s32.totalorder (!%p872_p4), %s1654_s15, 0 }
  0x4c   : > { %285 = sbr.rel (%p872_p4) target bundleno = 118 (0x76), region = 40 }
  0x53   : > { %288 = sbr.rel (!%p1661_p3) target bundleno = 118 (0x76), region = 44  ;;  %s289_s26 = sand.u32 (%p1661_p3), 1, %s1255_s29  }
  0x54   : > { %s874_s14 = sshll.u32 (%p1661_p3), %s1259_s30, 1  ;;  %s873_s10 = sshll.u32 (%p1661_p3), %s289_s26, 4 }
  0x55   : > { %s295_s12 = ssub.s32 (%p1661_p3), 3, %s874_s14  ;;  %s1455_s13 = scalar_lea.sflag (%p1661_p3), [#allocation3], %s289_s26 }
  0x56   : > { %p296_p5 = scmp.lt.s32.totalorder (%p1661_p3), %s295_s12, 2  ;;  %s293_s20 = scalar_lea.vmem (%p1661_p3), [#allocation2], %s873_s10 }
  0x5a   : > { %s1677_s12 = smov (!%p296_p5, %s295_s12), 2 }
  0x5b   : > { %s1452_s22 = sshll.u32 %s1677_s12, 7 }
  0x5c   : > { %s300_s24 = ssub.s32 256, %s1452_s22 }
  0x5d   : > { %301 = vsyncadd %s1455_s13, %s300_s24  ;;  %p876_p2 = scmp.ne.s32.totalorder %s1452_s22, 0  ;;  %s932_s15 = sshll.u32 %s1259_s30, 8 }
  0x5e   : > { %s1463_s27 = scalar_lea.hbm %s1635_s0, %s932_s15  ;;  %s306_s11 = sshll.u32 %s293_s20, 4  ;;  %s1465_s11 = int_to_ptr.vmem [resolvable:$true] %s306_s11 }
  0x5f   : > { %s1129_s18 = scalar_lea.hbm %s1463_s27, %s1452_s22  ;;  %s1133_s14 = scalar_lea.hbm %s1635_s0, 384 }
  0x60   : > { %p1130_p6 = scmp.ne.s32.totalorder %s1463_s27, %s1129_s18  ;;  %p1134_p13 = scmp.lt.u32.totalorder %s1463_s27, %s1635_s0 }
  0x61   : > { %p1135_p0 = scmp.lt.u32.totalorder %s1133_s14, %s1129_s18  ;;  %p1137_p8 = scmp.lt.u32.totalorder %s1129_s18, %s1463_s27 }
  0x62   : > { %p1131_p11 = pnand %p1130_p6, %p876_p2 }
  0x63   : > { %p1136_p7 = por %p1135_p0, %p1134_p13 }
  0x64   : > { %p1132_p12 = pneg %p1131_p11 }
  0x65   : > { %p1138_p9 = por %p1137_p8, %p1136_p7 }
  0x67   : > { %p1139_p10 = pnand %p1138_p9, %p1132_p12 }
  0x69   : > { %1142 = shalt.err (!%p1139_p10)
}
  0x6a   : > { %s1143_s24 = scalar_lea.vmem %s1465_s11, %s1452_s22  ;;  %s1267_s20 = smov [#allocation2]  }
  0x6b   : > { %p1144_p1 = scmp.ne.s32.totalorder %s1465_s11, %s1143_s24  ;;  %s1147_s15 = sshll.u32 %s1267_s20, 4  ;;  %s1148_s15 = int_to_ptr.vmem [resolvable:$false] %s1147_s15 }
  0x6c   : > { %s1149_s23 = scalar_lea.vmem %s1148_s15, 512  ;;  %p1150_p6 = scmp.lt.s32.totalorder %s1465_s11, %s1148_s15 }
  0x6d   : > { %p1145_p3 = pnand %p1144_p1, %p876_p2  ;;  %p1151_p11 = scmp.lt.s32.totalorder %s1149_s23, %s1143_s24 }
  0x6f   : > { %p1146_p5 = pneg %p1145_p3  ;;  %p1152_p13 = por %p1151_p11, %p1150_p6 }
  0x71   : > { %p1153_p0 = pnand %p1152_p13, %p1146_p5 }
  0x73   : > { %1156 = shalt.err (!%p1153_p0)
}
  0x74   : > { %s1268_s21 = smov 128   ;;  %s1269_s18 = smov 8  }
  0x75   : > { %312 = dma.hbm_to_vmem [thread:$0]  (%p876_p2), %s1463_s27, %s1452_s22, %s1465_s11, %s1455_s13, %s1268_s21, %s1268_s21, %s1269_s18  }
  0x76 PF: > { %p1662_p12 = scmp.ne.s32.totalorder %s1659_s19, 0 }
  0x77   : > { %s1495_s25 = sand.u32 (!%p1662_p12), 1, %s1251_s28   ;;  %p1663_p7 = scmp.ne.s32.totalorder (!%p1662_p12), %s1655_s16, 0 }
  0x78   : > { %318 = sbr.rel (%p1662_p12) target bundleno = 666 (0x29a), region = 48  ;;  %s1498_s26 = sshll.u32 (!%p1662_p12), %s1495_s25, 4 }
  0x79   : > { %s321_s14 = scalar_lea.sflag (!%p1662_p12), [#allocation3], %s1495_s25  ;;  %s324_s10 = scalar_lea.vmem (!%p1662_p12), [#allocation2], %s1498_s26 }
  0x7f   : > { %1230 = dma.done.wait (%p1663_p7), %s321_s14, 256  }
  0x80   : > { %1232 = vsyncadd (%p1663_p7), %s321_s14, 4294967040  ;;  %p1664_p2 = scmp.eq.s32.totalorder %s1345_s9, 0 }
  0x82   : > { %1234 = dma.done.wait (%p1664_p2), [#allocation6], 2560   ;;  %p1665_p8 = pmov %p1664_p2 }
  0x83   : > { %v1270_v0 = vmov 0.0   ;;  %vm1271_vm0 = vmmov 0   ;;  %v1037_v1 = vld [vmem:[#allocation5] sm:$0xff]   ;;  %v1038_v2 = vld [vmem:[#allocation5 + $0x8] sm:$0xff]   ;;  %v1039_v3 = vld [vmem:[#allocation5 + $0x10] sm:$0xff]   ;;  %vm430_vm1 = vcmask 523264   ;;  %v496_v35 = vlaneseq }
  0x84   : > { %1236 = vsyncadd (%p1665_p8), [#allocation6], 4294964736  ;;  %948 = vmatprep.subr.bf16.mxu0 %v1270_v0  ;;  %956 = vmatprep.mubr.msk.bf16.mxu0 %vm1271_vm0, %v1270_v0  ;;  %v1041_v4 = vld [vmem:[#allocation7 + $0x4] ss:$8 sps:$4 sm:$0xff]   ;;  %v1043_v5 = vld [vmem:[#allocation7] ss:$8 sps:$4 sm:$0xff]  }
  0x85   : > { %949 = vmatpush3.bf16.msra.mxu0 %v1037_v1  ;;  %v1044_v6 = vld [vmem:[#allocation7 + $0x14] ss:$8 sps:$4 sm:$0xff]   ;;  %586 = vmatprep.subr.bf16.mxu1 %v1041_v4  ;;  %v1046_v8 = vld [vmem:[#allocation7 + $0x10] ss:$8 sps:$4 sm:$0xff]   ;;  %v1047_v10 = vld [vmem:[#allocation7 + $0x24] ss:$8 sps:$4 sm:$0xff]  }
  0x86   : > { %950 = vmatprep.subr.bf16.mxu0 %v1270_v0  ;;  %v1040_v7 = vld [vmem:[#allocation5 + $0x18] sm:$0xff]   ;;  %587 = vmatpush1.bf16.msra.mxu1 %v1043_v5  ;;  %v388_v9 = vld [vmem:[%s324_s10] sm:$0xff]  ;;  %v1272_v24 = vmov 0   ;;  %v497_v36 = vshrl.u32 %v496_v35, 7  ;;  %s362_s20 = scalar_lea.vmem [#allocation8], %s1498_s26  ;;  %s1524_s15 = scalar_lea.vmem [#allocation9], %s1498_s26 }
  0x87   : > { %588 = vmatprep.subr.bf16.mxu1 %v1044_v6  ;;  %v389_v11 = vld [vmem:[%s324_s10 + $0x8] sm:$0xff]  ;;  %618 = vmatprep.mubr.bf16.mxu1 %v1272_v24  ;;  %v886_v25 = vld [vmem:[%s1637_s2] ss:$0 sm:$0xff]  ;;  %s694_s23 = scalar_lea.sflag [#allocation4], %s1495_s25  ;;  %s699_s21 = scalar_lea.sflag [#allocation10], %s1495_s25 }
  0x88   : > { %v1049_v12 = vld [vmem:[#allocation7 + $0x20] ss:$8 sps:$4 sm:$0xff]   ;;  %v1050_v13 = vld [vmem:[#allocation7 + $0x34] ss:$8 sps:$4 sm:$0xff]   ;;  %v390_v14 = vpack.c.bf16 %v389_v11, %v388_v9  ;;  %v1052_v15 = vld [vmem:[#allocation7 + $0x30] ss:$8 sps:$4 sm:$0xff]  }
  0x89   : > { %951 = vmatpush3.bf16.msra.mxu0 %v1038_v2  ;;  %v1053_v16 = vld [vmem:[#allocation7 + $0x44] ss:$8 sps:$4 sm:$0xff]   ;;  %v1055_v17 = vld [vmem:[#allocation7 + $0x40] ss:$8 sps:$4 sm:$0xff]   ;;  %v1056_v18 = vld [vmem:[#allocation7 + $0x54] ss:$8 sps:$4 sm:$0xff]  }
  0x8a   : > { %952 = vmatprep.subr.bf16.mxu0 %v1270_v0  ;;  %589 = vmatpush1.bf16.msra.mxu1 %v1046_v8  ;;  %v1058_v19 = vld [vmem:[#allocation7 + $0x50] ss:$8 sps:$4 sm:$0xff]   ;;  %v1059_v20 = vld [vmem:[#allocation7 + $0x64] ss:$8 sps:$4 sm:$0xff]   ;;  %v1061_v21 = vld [vmem:[#allocation7 + $0x60] ss:$8 sps:$4 sm:$0xff]  }
  0x8b   : > { %590 = vmatprep.subr.bf16.mxu1 %v1047_v10  ;;  %v1062_v22 = vld [vmem:[#allocation7 + $0x74] ss:$8 sps:$4 sm:$0xff]   ;;  %v1064_v23 = vld [vmem:[#allocation7 + $0x70] ss:$8 sps:$4 sm:$0xff]   ;;  %v498_v37 = vsub.s32 0, %v497_v36  ;;  %v502_v39 = vsub.s32 1, %v497_v36 }
  0x8c   : > { %v494_v38 = vld [vmem:[%s1639_s4] sm:$0x3]  ;;  %p1666_p9 = scmp.ne.s32.totalorder %s1656_s17, 0 }
  0x8d   : > { %953 = vmatpush3.bf16.msra.mxu0 %v1039_v3  ;;  %v499_v40 = vrot.slane %v494_v38, %v498_v37  ;;  %v503_v41 = vrot.slane %v494_v38, %v502_v39  ;;  %v633_v50 = vld [vmem:[%s1640_s5] sm:$0x3]  ;;  %s914_s18 = sshll.u32 (%p1666_p9), %s1345_s9, 1 }
  0x8e   : > { %954 = vmatprep.subr.bf16.mxu0 %v1270_v0  ;;  %591 = vmatpush1.bf16.msra.mxu1 %v1049_v12  ;;  %v663_v51 = vld [vmem:[%s1641_s6] sm:$0x3]  ;;  %v638_v52 = vrot.slane %v633_v50, %v498_v37  ;;  %v642_v54 = vrot.slane %v633_v50, %v502_v39  ;;  %s707_s14 = ssub.s32 (%p1666_p9), 3, %s914_s18 }
  0x8f   : > { %592 = vmatprep.subr.bf16.mxu1 %v1050_v13  ;;  %v668_v53 = vrot.slane %v663_v51, %v498_v37  ;;  %v672_v55 = vrot.slane %v663_v51, %v502_v39  ;;  %p708_p10 = scmp.lt.s32.totalorder (%p1666_p9), %s707_s14, 2 }
  0x91   : > { %955 = vmatpush3.bf16.msra.mxu0 %v1040_v7 }
  0x92   : > { %593 = vmatpush1.bf16.msra.mxu1 %v1052_v15 }
  0x93   : > { %594 = vmatprep.subr.bf16.mxu1 %v1053_v16 }
  0x94   : > { %957 = vmatmul.mubr.msk.bf16.vlgmr.msra.gmra.mrb[0].mxu0 %vm430_vm1, %v390_v14 }
  0x96   : > { %595 = vmatpush1.bf16.msra.mxu1 %v1055_v17 }
  0x97   : > { %596 = vmatprep.subr.bf16.mxu1 %v1056_v18 }
  0x9a   : > { %597 = vmatpush1.bf16.msra.mxu1 %v1058_v19 }
  0x9b   : > { %598 = vmatprep.subr.bf16.mxu1 %v1059_v20 }
  0x9e   : > { %599 = vmatpush1.bf16.msra.mxu1 %v1061_v21 }
  0x9f   : > { %600 = vmatprep.subr.bf16.mxu1 %v1062_v22 }
  0xa2   : > { %601 = vmatpush1.bf16.msra.mxu1 %v1064_v23 }
 0x167   : > { %v468_v26 = vpop.f32.mrb[0].mxu0 }
 0x168   : > { %v469_v27 = vadd.f32 %v886_v25, %v468_v26  ;;  %v958_v28 = vpop.f32.mrb[1].mxu0 }
 0x169   : > { %v471_v29 = vpop.f32.mrb[2].mxu0 }
 0x16a   : > { %v472_v30 = vadd.f32 %v886_v25, %v471_v29  ;;  %v959_v31 = vpop.f32.mrb[3].mxu0  ;;  %v475_v32 = vmax.f32 %v469_v27, 0.0 }
 0x16c   : > { %v476_v33 = vmax.f32 %v472_v30, 0.0 }
 0x16e   : > { %v477_v34 = vpack.c.bf16 %v476_v33, %v475_v32 }
 0x170   : > { %619 = vmatmul.mubr.bf16.vlgmr.msra.gmra.mrb[0].mxu1 %v477_v34 }
 0x243   : > { %v620_v42 = vpop.f32.mrb[0].mxu1 }
 0x244   : > { %v621_v43 = vadd.f32 %v620_v42, %v499_v40  ;;  %v622_v44 = vpop.f32.mrb[1].mxu1 }
 0x245   : > { %v623_v45 = vadd.f32 %v622_v44, %v503_v41  ;;  %v624_v46 = vpop.f32.mrb[2].mxu1 }
 0x246   : > { %1065 = vtanh.f32 %v621_v43  ;;  %v625_v47 = vadd.f32 %v624_v46, %v499_v40  ;;  %v626_v48 = vpop.f32.mrb[3].mxu1 }
 0x247   : > { %1067 = vtanh.f32 %v623_v45  ;;  %v627_v49 = vadd.f32 %v626_v48, %v503_v41 }
 0x248   : > { %1069 = vtanh.f32 %v625_v47 }
 0x249   : > { %1071 = vtanh.f32 %v627_v49 }
 0x250   : > { %v1066_v56 = vpop.eup %1065 }
 0x251   : > { %v1068_v57 = vpop.eup %1067  ;;  %v645_v58 = vmul.f32 %v1066_v56, %v638_v52  ;;  %v675_v59 = vmul.f32 %v1066_v56, %v668_v53 }
 0x252   : > { %v1070_v60 = vpop.eup %1069  ;;  %v646_v61 = vmul.f32 %v1068_v57, %v642_v54  ;;  %v676_v62 = vmul.f32 %v1068_v57, %v672_v55  ;;  %705 = sbr.rel (!%p1666_p9) target bundleno = 629 (0x275), region = 64 }
 0x253   : > { %v1072_v63 = vpop.eup %1071  ;;  %v647_v0 = vmul.f32 %v1070_v60, %v638_v52  ;;  %v677_v1 = vmul.f32 %v1070_v60, %v668_v53 }
 0x254   : > { %v933_v2 = vpack.c.bf16 %v646_v61, %v645_v58  ;;  %v935_v3 = vpack.c.bf16 %v676_v62, %v675_v59  ;;  %v648_v4 = vmul.f32 %v1072_v63, %v642_v54  ;;  %v678_v5 = vmul.f32 %v1072_v63, %v672_v55 }
 0x256   : > { %661 = vst [vmem:[%s362_s20] sm:$0xff] %v933_v2  ;;  %691 = vst [vmem:[%s1524_s15] sm:$0xff] %v935_v3  ;;  %v934_v6 = vpack.c.bf16 %v648_v4, %v647_v0  ;;  %v936_v7 = vpack.c.bf16 %v678_v5, %v677_v1 }
 0x258   : > { %662 = vst [vmem:[%s362_s20 + $0x8] sm:$0xff] %v934_v6  ;;  %692 = vst [vmem:[%s1524_s15 + $0x8] sm:$0xff] %v936_v7 }
 0x259   : > { %s1679_s14 = smov (!%p708_p10, %s707_s14), 2 }
 0x25a   : > { %s1533_s26 = sshll.u32 %s1679_s14, 7 }
 0x25b   : > { %s713_s10 = ssub.s32 256, %s1533_s26 }
 0x25c   : > { %714 = vsyncadd %s694_s23, %s713_s10  ;;  %p917_p1 = scmp.ne.s32.totalorder %s1533_s26, 0  ;;  %s939_s16 = sshll.u32 %s1345_s9, 8 }
 0x25d   : > { %s1543_s13 = scalar_lea.hbm %s1642_s7, %s939_s16  ;;  %s720_s27 = sshll.u32 %s362_s20, 4  ;;  %s1545_s27 = int_to_ptr.vmem [resolvable:$true] %s720_s27 }
 0x25e   : > { %s1157_s11 = scalar_lea.vmem %s1545_s27, %s1533_s26  ;;  %s1273_s12 = smov [#allocation8]  }
 0x25f   : > { %p1158_p3 = scmp.ne.s32.totalorder %s1545_s27, %s1157_s11  ;;  %s1161_s24 = sshll.u32 %s1273_s12, 4  ;;  %s1162_s24 = int_to_ptr.vmem [resolvable:$false] %s1161_s24 }
 0x260   : > { %s1163_s18 = scalar_lea.vmem %s1162_s24, 512  ;;  %p1164_p11 = scmp.lt.s32.totalorder %s1545_s27, %s1162_s24 }
 0x261   : > { %p1159_p5 = pnand %p1158_p3, %p917_p1  ;;  %p1165_p13 = scmp.lt.s32.totalorder %s1163_s18, %s1157_s11 }
 0x263   : > { %p1160_p6 = pneg %p1159_p5  ;;  %p1166_p0 = por %p1165_p13, %p1164_p11 }
 0x265   : > { %p1167_p12 = pnand %p1166_p0, %p1160_p6 }
 0x267   : > { %1170 = shalt.err (!%p1167_p12)
}
 0x268   : > { %s1171_s20 = scalar_lea.hbm %s1543_s13, %s1533_s26  ;;  %s1175_s16 = scalar_lea.hbm %s1642_s7, 384 }
 0x269   : > { %p1172_p7 = scmp.ne.s32.totalorder %s1543_s13, %s1171_s20  ;;  %p1176_p9 = scmp.lt.u32.totalorder %s1543_s13, %s1642_s7 }
 0x26a   : > { %p1177_p10 = scmp.lt.u32.totalorder %s1175_s16, %s1171_s20  ;;  %p1179_p5 = scmp.lt.u32.totalorder %s1171_s20, %s1543_s13 }
 0x26b   : > { %p1173_p2 = pnand %p1172_p7, %p917_p1 }
 0x26c   : > { %p1178_p3 = por %p1177_p10, %p1176_p9 }
 0x26d   : > { %p1174_p8 = pneg %p1173_p2 }
 0x26e   : > { %p1180_p6 = por %p1179_p5, %p1178_p3 }
 0x270   : > { %p1181_p11 = pnand %p1180_p6, %p1174_p8 }
 0x272   : > { %1184 = shalt.err (!%p1181_p11)
}
 0x273   : > { %s1274_s11 = smov 128   ;;  %s1275_s12 = smov 8  }
 0x274   : > { %726 = dma.vmem_to_hbm [thread:$0]  (%p917_p1), %s1545_s27, %s1533_s26, %s1543_s13, %s694_s23, %s1274_s11, %s1274_s11, %s1275_s12  }
 0x275 PF: > { %p1667_p13 = scmp.ne.s32.totalorder %s1656_s17, 0 }
 0x276   : > { %s922_s24 = sshll.u32 (%p1667_p13), %s1345_s9, 1 }
 0x277   : > { %729 = sbr.rel (!%p1667_p13) target bundleno = 666 (0x29a), region = 68  ;;  %s731_s18 = ssub.s32 (%p1667_p13), 3, %s922_s24 }
 0x278   : > { %p732_p0 = scmp.lt.s32.totalorder (%p1667_p13), %s731_s18, 2 }
 0x27e   : > { %s1681_s18 = smov (!%p732_p0, %s731_s18), 2 }
 0x27f   : > { %s1576_s20 = sshll.u32 %s1681_s18, 7 }
 0x280   : > { %s737_s14 = ssub.s32 256, %s1576_s20 }
 0x281   : > { %738 = vsyncadd %s699_s21, %s737_s14  ;;  %p925_p1 = scmp.ne.s32.totalorder %s1576_s20, 0  ;;  %s942_s17 = sshll.u32 %s1345_s9, 8 }
 0x282   : > { %s1586_s13 = scalar_lea.hbm %s1643_s8, %s942_s17  ;;  %s744_s27 = sshll.u32 %s1524_s15, 4  ;;  %s1589_s27 = int_to_ptr.vmem [resolvable:$true] %s744_s27 }
 0x283   : > { %s1185_s10 = scalar_lea.vmem %s1589_s27, %s1576_s20  ;;  %s1276_s16 = smov [#allocation9]  }
 0x284   : > { %p1186_p12 = scmp.ne.s32.totalorder %s1589_s27, %s1185_s10  ;;  %s1189_s19 = sshll.u32 %s1276_s16, 4  ;;  %s1190_s19 = int_to_ptr.vmem [resolvable:$false] %s1189_s19 }
 0x285   : > { %s1191_s9 = scalar_lea.vmem %s1190_s19, 512  ;;  %p1192_p8 = scmp.lt.s32.totalorder %s1589_s27, %s1190_s19 }
 0x286   : > { %p1187_p7 = pnand %p1186_p12, %p925_p1  ;;  %p1193_p9 = scmp.lt.s32.totalorder %s1191_s9, %s1185_s10 }
 0x288   : > { %p1188_p2 = pneg %p1187_p7  ;;  %p1194_p10 = por %p1193_p9, %p1192_p8 }
 0x28a   : > { %p1195_p3 = pnand %p1194_p10, %p1188_p2 }
 0x28c   : > { %1198 = shalt.err (!%p1195_p3)
}
 0x28d   : > { %s1199_s15 = scalar_lea.hbm %s1586_s13, %s1576_s20  ;;  %s1203_s12 = scalar_lea.hbm %s1643_s8, 384 }
 0x28e   : > { %p1200_p5 = scmp.ne.s32.totalorder %s1586_s13, %s1199_s15  ;;  %p1204_p13 = scmp.lt.u32.totalorder %s1586_s13, %s1643_s8 }
 0x28f   : > { %p1205_p0 = scmp.lt.u32.totalorder %s1203_s12, %s1199_s15  ;;  %p1207_p7 = scmp.lt.u32.totalorder %s1199_s15, %s1586_s13 }
 0x290   : > { %p1201_p6 = pnand %p1200_p5, %p925_p1 }
 0x291   : > { %p1206_p12 = por %p1205_p0, %p1204_p13 }
 0x292   : > { %p1202_p11 = pneg %p1201_p6 }
 0x293   : > { %p1208_p2 = por %p1207_p7, %p1206_p12 }
 0x295   : > { %p1209_p8 = pnand %p1208_p2, %p1202_p11 }
 0x297   : > { %1212 = shalt.err (!%p1209_p8)
}
 0x298   : > { %s1277_s14 = smov 128   ;;  %s1278_s17 = smov 8  }
 0x299   : > { %750 = dma.vmem_to_hbm [thread:$0]  (%p925_p1), %s1589_s27, %s1576_s20, %s1586_s13, %s699_s21, %s1277_s14, %s1277_s14, %s1278_s17  }
 0x29a PF: > { %s1668_s23 = sld [smem:[#allocation15_spill]]  ;;  %s1669_s26 = sld [smem:[#allocation18_spill]] }
 0x2a0   : > { %s759_s10 = sand.u32 1, %s1668_s23   ;;  %p1670_p9 = scmp.ne.s32.totalorder %s1669_s26, 0 }
 0x2a1   : > { %s760_s16 = scalar_lea.sflag [#allocation4], %s759_s10 }
 0x2a2   : > { %p979_p10 = pnand %p872_p4, %p1670_p9 }
 0x2a4   : > { %1238 = dma.done.wait (!%p979_p10), %s760_s16, 256  }
 0x2a5   : > { %1240 = vsyncadd (!%p979_p10), %s760_s16, 4294967040  ;;  %s769_s19 = scalar_lea.sflag [#allocation10], %s759_s10 }
 0x2a6   : > { %1242 = dma.done.wait (!%p979_p10), %s769_s19, 256  }
 0x2a7   : > { %1244 = vsyncadd (!%p979_p10), %s769_s19, 4294967040  ;;  %s1671_s30 = sld [smem:[#allocation16_spill]]  ;;  %s1672_s25 = sld [smem:[#allocation17_spill]] }
 0x2a8   : > { %s1673_s27 = smov %s1251_s28  ;;  %s1674_s28 = smov %s1255_s29 }
 0x2ad   : > { %p26_p1 = scmp.ge.s32.totalorder %s1671_s30, 4   ;;  %s1675_s29 = smov %s1672_s25 }
 0x2af   :  { %28 = sbr.rel (!%p26_p1) target bundleno = 8 (0x8), region = 118 }
 0x2b6   :  { %774 = vsyncpa [#allocation3], 1 }
 0x2b7   :  { %776 = vsyncpa [#allocation3 + $0x1], 1 }
 0x2b8   :  { %777 = vsyncpa [#allocation6], 1 }
 0x2b9   :  { %778 = vsyncpa [#allocation4], 1 }
 0x2ba   :  { %780 = vsyncpa [#allocation4 + $0x1], 1 }
 0x2bb   :  { %781 = vsyncpa [#allocation10], 1 }
 0x2bc   :  { %783 = vsyncpa [#allocation10 + $0x1], 1 }

</bundles_post_ra>
